<compile_context>
chip_gen: v6e
topology: v6e:2x2x1
jax: 0.10.0
libtpu: 0.0.40
codegen_flags: <defaults>
</compile_context>

<pallas_src>
import functools

import jax
import jax.numpy as jnp
from jax import lax
from jax.experimental import pallas as pl
from jax.experimental.pallas import tpu as pltpu


def _round_up(x, m):
    return ((x + m - 1) // m) * m


def _sigmoid(x):
    # tanh-based sigmoid: single EUP op, no f32 divide on the serial path.
    return 0.5 * (jnp.tanh(0.5 * x) + 1.0)


def _char_lstm_kernel(maxlen_ref, tok_ref, len_ref, table_ref, whh_ref, o_ref, *, hidden):
    """One batch tile; the whole time recurrence is an in-kernel loop.

    maxlen_ref : SMEM int32 [num_tiles]  per-tile max sequence length (scalar prefetch)
    tok_ref    : VMEM int32 [T, NB, 1]   token slab for this batch tile
    len_ref    : VMEM int32 [NB, 1]      sequence lengths
    table_ref  : VMEM bf16  [V, 4H]      fused (char_embedding @ W_ih^T + b_ih + b_hh)
    whh_ref    : VMEM bf16  [H, 4H]      W_hh^T
    o_ref      : VMEM f32   [NB, H]      final hidden state per value
    """
    b = pl.program_id(0)
    t_steps, nb, _ = tok_ref.shape
    vocab = table_ref.shape[0]

    # Loop-invariant hoists: weight reads, one-hot iota, lengths (JAX does not CSE these).
    table = table_ref[...]                                         # [V, 4H]
    whh = whh_ref[...]                                             # [H, 4H]
    lens = len_ref[...]                                            # [NB, 1]
    iota_v = lax.broadcasted_iota(jnp.int32, (nb, vocab), 1)       # [NB, V]

    # Per-tile dynamic trip count: skip all steps past this tile's longest sequence.
    t_max = jnp.minimum(maxlen_ref[b], t_steps)

    def step(t, carry):
        h_prev, c_prev = carry
        tok_t = tok_ref[t]                                         # [NB, 1] int32
        # Fused embedding gather + input projection + bias: one one-hot MXU matmul.
        onehot = (iota_v == tok_t).astype(table.dtype)             # [NB, V]
        gates = (jnp.dot(onehot, table, preferred_element_type=jnp.float32)
                 + jnp.dot(h_prev.astype(whh.dtype), whh,
                           preferred_element_type=jnp.float32))    # [NB, 4H]
        # PyTorch nn.LSTM gate order: i, f, g, o.
        i_g = _sigmoid(gates[:, 0 * hidden:1 * hidden])
        f_g = _sigmoid(gates[:, 1 * hidden:2 * hidden])
        g_g = jnp.tanh(gates[:, 2 * hidden:3 * hidden])
        o_g = _sigmoid(gates[:, 3 * hidden:4 * hidden])
        c_new = f_g * c_prev + i_g * g_g
        h_new = o_g * jnp.tanh(c_new)
        # pack_padded_sequence semantics: freeze state once t >= length.
        active = t < lens                                          # [NB, 1] bool
        return (jnp.where(active, h_new, h_prev),
                jnp.where(active, c_new, c_prev))

    h0 = jnp.zeros((nb, hidden), jnp.float32)
    c0 = jnp.zeros((nb, hidden), jnp.float32)
    h_fin, _ = lax.fori_loop(0, t_max, step, (h0, c0))
    o_ref[...] = h_fin.astype(o_ref.dtype)


def char_value_lstm_encoder(padded_tokens, lengths, char_embed,
                            w_ih, w_hh, b_ih, b_hh, *,
                            batch_tile=256, mxu_dtype=jnp.bfloat16):
    """padded_tokens: [T, N] int (time-major, as produced by pad_int_seq).
       lengths: [N] int.  char_embed: [V, H] f32.
       w_ih, w_hh: [4H, H] f32 (PyTorch nn.LSTM layout).  b_ih, b_hh: [4H] f32.
       Returns [N, H] final hidden state per value."""
    t_steps, n = padded_tokens.shape
    vocab, hidden = char_embed.shape
    assert w_ih.shape == (4 * hidden, hidden)
    assert w_hh.shape == (4 * hidden, hidden)

    # Sort values by length (descending) so batch tiles are length-homogeneous; together
    # with the per-tile dynamic trip count this skips most padding work.
    lengths = lengths.astype(jnp.int32)
    order = jnp.argsort(-lengths)
    inv_order = jnp.argsort(order)
    tokens_s = padded_tokens.astype(jnp.int32)[:, order]
    lengths_s = lengths[order]

    # Batch tile: multiple of 8 sublanes; keep >= 2 tiles when possible (v7x megacore).
    nb = min(batch_tile, _round_up(n, 8))
    if _round_up(n, nb) // nb < 2 and nb >= 16:
        nb = _round_up(nb // 2, 8)
    n_pad = _round_up(n, nb)
    num_tiles = n_pad // nb

    tok = jnp.pad(tokens_s, ((0, 0), (0, n_pad - n)))[:, :, None]       # [T, N_pad, 1]
    lens = jnp.pad(lengths_s, (0, n_pad - n))
    lens2d = lens[:, None]                                              # [N_pad, 1]
    tile_maxlen = jnp.max(lens.reshape(num_tiles, nb), axis=1)          # [num_tiles]

    # Fused input path: embedding . W_ih^T with both biases folded in (one-hot rows sum
    # to 1), so the serial recurrence carries only the recurrent matmul.
    hp = jax.lax.Precision.HIGHEST
    table = (jnp.dot(char_embed, w_ih.T, precision=hp)
             + (b_ih + b_hh)[None, :]).astype(mxu_dtype)                # [V, 4H]
    whh_t = jnp.transpose(w_hh).astype(mxu_dtype)                       # [H, 4H]

    out = pl.pallas_call(
        functools.partial(_char_lstm_kernel, hidden=hidden),
        grid_spec=pltpu.PrefetchScalarGridSpec(
            num_scalar_prefetch=1,
            grid=(num_tiles,),
            in_specs=[
                pl.BlockSpec((t_steps, nb, 1), lambda b, ml: (0, b, 0)),     # token slab
                pl.BlockSpec((nb, 1), lambda b, ml: (b, 0)),                 # lengths
                pl.BlockSpec((vocab, 4 * hidden), lambda b, ml: (0, 0)),     # fused table
                pl.BlockSpec((hidden, 4 * hidden), lambda b, ml: (0, 0)),    # W_hh^T
            ],
            out_specs=pl.BlockSpec((nb, hidden), lambda b, ml: (b, 0)),
        ),
        out_shape=jax.ShapeDtypeStruct((n_pad, hidden), char_embed.dtype),
        compiler_params=pltpu.CompilerParams(
            dimension_semantics=("parallel",)),
        cost_estimate=pl.CostEstimate(
            flops=2 * t_steps * n_pad * 4 * hidden * (vocab + hidden),
            transcendentals=5 * t_steps * n_pad * hidden,
            bytes_accessed=(tok.size * 4 + lens2d.size * 4
                            + table.size * 2 + whh_t.size * 2
                            + n_pad * hidden * 4),
        ),
    )(tile_maxlen, tok, lens2d, table, whh_t)

    # Undo the length sort.
    return out[:n][inv_order]


if __name__ == "__main__":
    key = jax.random.PRNGKey(0)
    k_emb, k_ih, k_hh, k_bi, k_bh, k_tok = jax.random.split(key, 6)

    hidden = 32       # hidden_size
    vocab = 96        # val_char_table.vocab_size
    n_values = 8      # number of values to encode
    max_len = 12      # padded character-sequence length (T)

    scale = 0.3
    char_embed = jax.random.normal(k_emb, (vocab, hidden), jnp.float32) * scale
    w_ih = jax.random.normal(k_ih, (4 * hidden, hidden), jnp.float32) * scale
    w_hh = jax.random.normal(k_hh, (4 * hidden, hidden), jnp.float32) * scale
    b_ih = jax.random.normal(k_bi, (4 * hidden,), jnp.float32) * scale
    b_hh = jax.random.normal(k_bh, (4 * hidden,), jnp.float32) * scale

    # TODO(synk): repr(value) + val_char_table.encode are host-side Python string ops
    # with no Pallas equivalent; deterministic already-encoded char-id sequences stand in.
    lengths = jnp.array([3, 12, 7, 1, 9, 5, 12, 4], dtype=jnp.int32)
    tokens = jax.random.randint(k_tok, (max_len, n_values), 1, vocab, dtype=jnp.int32)
    t_iota = jnp.arange(max_len)[:, None]
    tokens = jnp.where(t_iota < lengths[None, :], tokens, 0)   # pad_sequence pads with 0

    out = char_value_lstm_encoder(tokens, lengths, char_embed, w_ih, w_hh, b_ih, b_hh)
    out = jax.block_until_ready(out)

    # Pure-JAX reference (packed-sequence LSTM final hidden state), full f32.
    hp = jax.lax.Precision.HIGHEST
    x_ref = char_embed[tokens]                                  # [T, N, H]
    h = jnp.zeros((n_values, hidden), jnp.float32)
    c = jnp.zeros((n_values, hidden), jnp.float32)
    for t in range(max_len):
        gates = (jnp.matmul(x_ref[t], w_ih.T, precision=hp)
                 + jnp.matmul(h, w_hh.T, precision=hp) + b_ih + b_hh)
        i = jax.nn.sigmoid(gates[:, :hidden])
        f = jax.nn.sigmoid(gates[:, hidden:2 * hidden])
        g = jnp.tanh(gates[:, 2 * hidden:3 * hidden])
        o = jax.nn.sigmoid(gates[:, 3 * hidden:4 * hidden])
        c_new = f * c + i * g
        h_new = o * jnp.tanh(c_new)
        m = (t < lengths)[:, None]
        h = jnp.where(m, h_new, h)
        c = jnp.where(m, c_new, c)
    ref = h

    assert out.shape == ref.shape == (n_values, hidden), (out.shape, ref.shape)
    err = float(jnp.max(jnp.abs(out - ref)))
    # bf16 MXU operands (per perf review) with f32 accumulate: error stays well below 3e-2.
    assert err < 3e-2, f"max abs err {err}"
    print("KERNEL_OK")
</pallas_src>

<mosaic_0001>
module attributes {stable_mosaic.version = 11 : i64} {
  func.func @_char_lstm_kernel(%arg0: i32, %arg1: memref<1xi32, #tpu.memory_space<smem>>, %arg2: memref<12x8x1xi32, #tpu.memory_space<vmem>>, %arg3: memref<8x1xi32, #tpu.memory_space<vmem>>, %arg4: memref<96x128xbf16, #tpu.memory_space<vmem>>, %arg5: memref<32x128xbf16, #tpu.memory_space<vmem>>, %arg6: memref<8x32xf32, #tpu.memory_space<vmem>>) attributes {dimension_semantics = [#tpu.dimension_semantics<parallel>], iteration_bounds = array<i64: 1>, scalar_prefetch = 1 : i64, scratch_operands = 0 : i64, tpu.core_type = #tpu.core_type<tc>, window_params = [{transform_indices = @transform_0, window_bounds = array<i64: 12, 8, 1>}, {transform_indices = @transform_1, window_bounds = array<i64: 8, 1>}, {pipeline_mode = #tpu.pipeline_mode<synchronous>, transform_indices = @transform_2, window_bounds = array<i64: 96, 128>}, {pipeline_mode = #tpu.pipeline_mode<synchronous>, transform_indices = @transform_3, window_bounds = array<i64: 32, 128>}, {transform_indices = @transform_4, window_bounds = array<i64: 8, 32>}]} {
    %c0 = arith.constant 0 : index
    %c0_0 = arith.constant 0 : index
    %0 = vector.load %arg4[%c0, %c0_0] : memref<96x128xbf16, #tpu.memory_space<vmem>>, vector<96x128xbf16>
    %c0_1 = arith.constant 0 : index
    %c0_2 = arith.constant 0 : index
    %1 = vector.load %arg5[%c0_1, %c0_2] : memref<32x128xbf16, #tpu.memory_space<vmem>>, vector<32x128xbf16>
    %c0_3 = arith.constant 0 : index
    %c0_4 = arith.constant 0 : index
    %2 = vector.load %arg3[%c0_3, %c0_4] : memref<8x1xi32, #tpu.memory_space<vmem>>, vector<8x1xi32>
    %3 = tpu.iota {dimensions = array<i32: 1>} : vector<8x96xi32>
    %4 = arith.index_cast %arg0 : i32 to index
    %5 = memref.load %arg1[%4] : memref<1xi32, #tpu.memory_space<smem>>
    %c12_i32 = arith.constant 12 : i32
    %6 = arith.minsi %5, %c12_i32 : i32
    %cst = arith.constant 0.000000e+00 : f32
    %7 = vector.broadcast %cst : f32 to vector<8x32xf32>
    %cst_5 = arith.constant 0.000000e+00 : f32
    %8 = vector.broadcast %cst_5 : f32 to vector<8x32xf32>
    %c0_i32 = arith.constant 0 : i32
    %9 = arith.subi %6, %c0_i32 : i32
    %10 = arith.addi %c0_i32, %9 : i32
    %c1_i32 = arith.constant 1 : i32
    %11:2 = scf.for %arg7 = %c0_i32 to %10 step %c1_i32 iter_args(%arg8 = %7, %arg9 = %8) -> (vector<8x32xf32>, vector<8x32xf32>)  : i32 {
      %13 = arith.index_cast %arg7 : i32 to index
      %c0_8 = arith.constant 0 : index
      %c0_9 = arith.constant 0 : index
      %14 = vector.load %arg2[%13, %c0_8, %c0_9] : memref<12x8x1xi32, #tpu.memory_space<vmem>>, vector<1x8x1xi32>
      %15 = vector.shape_cast %14 : vector<1x8x1xi32> to vector<8x1xi32>
      %16 = vector.broadcast %15 : vector<8x1xi32> to vector<8x96xi32>
      %17 = arith.cmpi eq, %3, %16 : vector<8x96xi32>
      %18 = arith.extui %17 : vector<8x96xi1> to vector<8x96xi32>
      %19 = arith.sitofp %18 : vector<8x96xi32> to vector<8x96xf32>
      %20 = arith.truncf %19 : vector<8x96xf32> to vector<8x96xbf16>
      %cst_10 = arith.constant dense<0.000000e+00> : vector<8x128xf32>
      %21 = tpu.matmul %20, %0, %cst_10 {dimension_numbers = #tpu.dot_dimension_numbers<[1], [0], [0], [1], [0, 0, 1, 1], [], []>} : vector<8x96xbf16>, vector<96x128xbf16>, vector<8x128xf32> -> vector<8x128xf32>
      %22 = arith.truncf %arg8 : vector<8x32xf32> to vector<8x32xbf16>
      %cst_11 = arith.constant dense<0.000000e+00> : vector<8x128xf32>
      %23 = tpu.matmul %22, %1, %cst_11 {dimension_numbers = #tpu.dot_dimension_numbers<[1], [0], [0], [1], [0, 0, 1, 1], [], []>} : vector<8x32xbf16>, vector<32x128xbf16>, vector<8x128xf32> -> vector<8x128xf32>
      %24 = arith.addf %21, %23 : vector<8x128xf32>
      %25 = vector.extract_strided_slice %24 {offsets = [0, 0], sizes = [8, 32], strides = [1, 1]} : vector<8x128xf32> to vector<8x32xf32>
      %cst_12 = arith.constant 5.000000e-01 : f32
      %26 = vector.broadcast %cst_12 : f32 to vector<8x32xf32>
      %27 = arith.mulf %26, %25 : vector<8x32xf32>
      %28 = math.tanh %27 : vector<8x32xf32>
      %cst_13 = arith.constant 1.000000e+00 : f32
      %29 = vector.broadcast %cst_13 : f32 to vector<8x32xf32>
      %30 = arith.addf %28, %29 : vector<8x32xf32>
      %cst_14 = arith.constant 5.000000e-01 : f32
      %31 = vector.broadcast %cst_14 : f32 to vector<8x32xf32>
      %32 = arith.mulf %31, %30 : vector<8x32xf32>
      %33 = vector.extract_strided_slice %24 {offsets = [0, 32], sizes = [8, 32], strides = [1, 1]} : vector<8x128xf32> to vector<8x32xf32>
      %cst_15 = arith.constant 5.000000e-01 : f32
      %34 = vector.broadcast %cst_15 : f32 to vector<8x32xf32>
      %35 = arith.mulf %34, %33 : vector<8x32xf32>
      %36 = math.tanh %35 : vector<8x32xf32>
      %cst_16 = arith.constant 1.000000e+00 : f32
      %37 = vector.broadcast %cst_16 : f32 to vector<8x32xf32>
      %38 = arith.addf %36, %37 : vector<8x32xf32>
      %cst_17 = arith.constant 5.000000e-01 : f32
      %39 = vector.broadcast %cst_17 : f32 to vector<8x32xf32>
      %40 = arith.mulf %39, %38 : vector<8x32xf32>
      %41 = vector.extract_strided_slice %24 {offsets = [0, 64], sizes = [8, 32], strides = [1, 1]} : vector<8x128xf32> to vector<8x32xf32>
      %42 = math.tanh %41 : vector<8x32xf32>
      %43 = vector.extract_strided_slice %24 {offsets = [0, 96], sizes = [8, 32], strides = [1, 1]} : vector<8x128xf32> to vector<8x32xf32>
      %cst_18 = arith.constant 5.000000e-01 : f32
      %44 = vector.broadcast %cst_18 : f32 to vector<8x32xf32>
      %45 = arith.mulf %44, %43 : vector<8x32xf32>
      %46 = math.tanh %45 : vector<8x32xf32>
      %cst_19 = arith.constant 1.000000e+00 : f32
      %47 = vector.broadcast %cst_19 : f32 to vector<8x32xf32>
      %48 = arith.addf %46, %47 : vector<8x32xf32>
      %cst_20 = arith.constant 5.000000e-01 : f32
      %49 = vector.broadcast %cst_20 : f32 to vector<8x32xf32>
      %50 = arith.mulf %49, %48 : vector<8x32xf32>
      %51 = arith.mulf %40, %arg9 : vector<8x32xf32>
      %52 = arith.mulf %32, %42 : vector<8x32xf32>
      %53 = arith.addf %51, %52 : vector<8x32xf32>
      %54 = math.tanh %53 : vector<8x32xf32>
      %55 = arith.mulf %50, %54 : vector<8x32xf32>
      %56 = vector.broadcast %arg7 : i32 to vector<8x1xi32>
      %57 = arith.cmpi slt, %56, %2 : vector<8x1xi32>
      %58 = vector.shape_cast %57 : vector<8x1xi1> to vector<8x1xi1>
      %59 = vector.broadcast %58 : vector<8x1xi1> to vector<8x32xi1>
      %60 = arith.select %59, %55, %arg8 : vector<8x32xi1>, vector<8x32xf32>
      %61 = vector.shape_cast %57 : vector<8x1xi1> to vector<8x1xi1>
      %62 = vector.broadcast %61 : vector<8x1xi1> to vector<8x32xi1>
      %63 = arith.select %62, %53, %arg9 : vector<8x32xi1>, vector<8x32xf32>
      scf.yield %60, %63 : vector<8x32xf32>, vector<8x32xf32>
    }
    %c0_6 = arith.constant 0 : index
    %c0_7 = arith.constant 0 : index
    %12 = vector.load %arg6[%c0_6, %c0_7] : memref<8x32xf32, #tpu.memory_space<vmem>>, vector<8x32xf32>
    tpu.vector_store %arg6[%c0_6, %c0_7], %11#0 {strides = array<i32>} : memref<8x32xf32, #tpu.memory_space<vmem>>, vector<8x32xf32>,
    return
  }
  func.func @transform_0(%arg0: i32, %arg1: memref<1xi32, #tpu.memory_space<smem>>) -> (i32, i32, i32) {
    %c0_i32 = arith.constant 0 : i32
    %c0_i32_0 = arith.constant 0 : i32
    %c0_i32_1 = arith.constant 0 : i32
    return %c0_i32, %arg0, %c0_i32_0 : i32, i32, i32
  }
  func.func @transform_1(%arg0: i32, %arg1: memref<1xi32, #tpu.memory_space<smem>>) -> (i32, i32) {
    %c0_i32 = arith.constant 0 : i32
    %c0_i32_0 = arith.constant 0 : i32
    return %arg0, %c0_i32 : i32, i32
  }
  func.func @transform_2(%arg0: i32, %arg1: memref<1xi32, #tpu.memory_space<smem>>) -> (i32, i32) {
    %c0_i32 = arith.constant 0 : i32
    %c0_i32_0 = arith.constant 0 : i32
    %c0_i32_1 = arith.constant 0 : i32
    return %c0_i32, %c0_i32_0 : i32, i32
  }
  func.func @transform_3(%arg0: i32, %arg1: memref<1xi32, #tpu.memory_space<smem>>) -> (i32, i32) {
    %c0_i32 = arith.constant 0 : i32
    %c0_i32_0 = arith.constant 0 : i32
    %c0_i32_1 = arith.constant 0 : i32
    return %c0_i32, %c0_i32_0 : i32, i32
  }
  func.func @transform_4(%arg0: i32, %arg1: memref<1xi32, #tpu.memory_space<smem>>) -> (i32, i32) {
    %c0_i32 = arith.constant 0 : i32
    %c0_i32_0 = arith.constant 0 : i32
    return %arg0, %c0_i32 : i32, i32
  }
}

</mosaic_0001>

<bundles_post_ra>
// kernel: tpu_custom_call.1
= control target key start
LH: loop header
LB: loop body
LE: loop exit
PB: predicated region body
PF: predicated region fallthrough
CT: control target
= control target key end

     0   :  { %11 = vsyncpa [#allocation5], 0  ;;  %v38_v5 = vlaneseq  ;;  %v550_v19 = vmov 0.0   ;;  %s611_s0 = inlined_call_operand.<no memory space> [shape: s32[1], index: 0, kind: input, shape index: {}]   ;;  %s612_s1 = inlined_call_operand.vmem [shape: s32[12,8,1], index: 1, kind: input, shape index: {}]   ;;  %s613_s2 = inlined_call_operand.vmem [shape: s32[8,1], index: 2, kind: input, shape index: {}]   ;;  %s614_s3 = inlined_call_operand.vmem [shape: bf16[96,128], index: 3, kind: input, shape index: {}]   ;;  %s615_s4 = inlined_call_operand.vmem [shape: bf16[32,128], index: 4, kind: input, shape index: {}]   ;;  %s616_s5 = inlined_call_operand.hbm [shape: f32[8,32], index: 5, kind: output, shape index: {}]  }
   0x1   :  { %v455_v0 = vld [vmem:[%s614_s3] sm:$0xf]  ;;  %v460_v1 = vld [vmem:[%s614_s3 + $0x4] sm:$0xf]  ;;  %v465_v2 = vld [vmem:[%s614_s3 + $0x8] sm:$0xf] }
   0x2   :  { %v470_v3 = vld [vmem:[%s614_s3 + $0xc] sm:$0xf]  ;;  %v475_v4 = vld [vmem:[%s614_s3 + $0x10] sm:$0xf]  ;;  %v480_v6 = vld [vmem:[%s614_s3 + $0x14] sm:$0xf] }
   0x3   :  { %v485_v7 = vld [vmem:[%s614_s3 + $0x18] sm:$0xf]  ;;  %v490_v8 = vld [vmem:[%s614_s3 + $0x1c] sm:$0xf]  ;;  %v495_v9 = vld [vmem:[%s614_s3 + $0x20] sm:$0xf] }
   0x4   :  { %v500_v10 = vld [vmem:[%s614_s3 + $0x24] sm:$0xf]  ;;  %v505_v11 = vld [vmem:[%s614_s3 + $0x28] sm:$0xf]  ;;  %v510_v12 = vld [vmem:[%s614_s3 + $0x2c] sm:$0xf] }
   0x5   :  { %v515_v13 = vld [vmem:[%s615_s4] sm:$0xf]  ;;  %v520_v14 = vld [vmem:[%s615_s4 + $0x4] sm:$0xf]  ;;  %v525_v15 = vld [vmem:[%s615_s4 + $0x8] sm:$0xf] }
   0x6   :  { %v530_v16 = vld [vmem:[%s615_s4 + $0xc] sm:$0xf]  ;;  %v535_v17 = vld [vmem:[%s613_s2] sm:$0xff]  ;;  %v537_v18 = vand.u32 127, %v38_v5  ;;  %p41_p0 = scmp.lt.s32.totalorder %s611_s0, 12  ;;  %p278_p1 = scmp.le.s32.totalorder %s611_s0, 0 }
   0x7   :  { %s556_s2 = smov (!%p278_p1), 0  }
   0x8   :  { %s545_s30 = scalar_select %p41_p0, %s611_s0, 12 }
   0x9   :  { %258 = sbr.rel (%p278_p1) target bundleno = 723 (0x2d3), region = 38 }
   0xe   :  { %v552_v20 = vmov 0.0   ;;  %v554_v21 = vmov 0.0  }
   0xf LB: > { %v276_v22 = vcombine.low %v505_v11, %v510_v12  ;;  %v415_v23 = vmov 0   ;;  %v416_v24 = vmov 0.0   ;;  %s266_s0 = sshll.u32 %s409_s2, 3  ;;  %v275_v25 = vcombine.low %v495_v9, %v500_v10  ;;  %s418_s10 = smov 32   ;;  %s409_s2 = sphi %s556_s2, %s46_s2   ;;  %v405_v21 = vphi %v554_v21, %v617_v21   ;;  %v401_v20 = vphi %v552_v20, %v231_v20  }
  0x10   : > { %354 = vset.pattern.permute.xlu0 %v415_v23  ;;  %299 = vmatprep.subr.bf16.mxu1 %v416_v24  ;;  %v269_v26 = vcombine.low %v525_v15, %v530_v16  ;;  %s52_s9 = scalar_lea.vmem %s612_s1, %s266_s0  ;;  %v223_v27 = vstv %s409_s2  ;;  %v268_v29 = vcombine.low %v515_v13, %v520_v14  ;;  %vm417_vm0 = vmmov 0   ;;  %s419_s11 = smov 64  }
  0x11   : > { %300 = vmatpush3.bf16.msra.mxu1 %v276_v22  ;;  %291 = vmatprep.subr.bf16.mxu0 %v416_v24  ;;  %v53_v28 = vld [vmem:[%s52_s9] sm:$0xff]  ;;  %v61_v30 = vpack.c.bf16 %v405_v21, %v405_v21  ;;  %v274_v31 = vcombine.low %v485_v7, %v490_v8  ;;  %vm224_vm1 = vcmp.lt.s32.totalorder %v223_v27, %v535_v17  ;;  %vm77_vm3 = vcmask 261120   ;;  %s46_s2 = sadd.s32 1, %s409_s2  }
  0x12   : > { %301 = vmatprep.subr.bf16.mxu1 %v416_v24  ;;  %292 = vmatpush3.bf16.msra.mxu0 %v269_v26  ;;  %v225_v32 = vsel %vm224_vm1, 1, %v415_v23  ;;  %v273_v33 = vcombine.low %v475_v4, %v480_v6  ;;  %v272_v34 = vcombine.low %v465_v2, %v470_v3  ;;  %v271_v35 = vcombine.low %v455_v0, %v460_v1  ;;  %p45_p2 = scmp.ge.s32.totalorder %s46_s2, %s545_s30 }
  0x13   : > { %295 = vmatprep.mubr.msk.bf16.mxu0 %vm417_vm0, %v416_v24  ;;  %55 = vperm.xlu0 %354, %v53_v28   ;;  %vm157_vm4 = vcmask 785408  }
  0x14   : > { %293 = vmatprep.subr.bf16.mxu0 %v416_v24  ;;  %311 = vmatprep.mubr.msk.bf16.mxu1 %vm417_vm0, %v416_v24 }
  0x15   : > { %302 = vmatpush3.bf16.msra.mxu1 %v275_v25 }
  0x16   : > { %303 = vmatprep.subr.bf16.mxu1 %v416_v24  ;;  %294 = vmatpush3.bf16.msra.mxu0 %v268_v29 }
  0x17   : > { %63 = vrot.lane.b32.xlu0 %v61_v30, %s418_s10 }
  0x19   : > { %304 = vmatpush3.bf16.msra.mxu1 %v274_v31 }
  0x1a   : > { %305 = vmatprep.subr.bf16.mxu1 %v416_v24 }
  0x1b   : > { %227 = vperm.xlu0 %354, %v225_v32  }
  0x1d   : > { %306 = vmatpush3.bf16.msra.mxu1 %v273_v33 }
  0x1e   : > { %307 = vmatprep.subr.bf16.mxu1 %v416_v24 }
  0x21   : > { %308 = vmatpush3.bf16.msra.mxu1 %v272_v34 }
  0x22   : > { %309 = vmatprep.subr.bf16.mxu1 %v416_v24 }
  0x25   : > { %310 = vmatpush3.bf16.msra.mxu1 %v271_v35 }
  0x8e   : > { %v56_v36 = vpop.permute.xlu0 %55 }
  0x8f   : > { %vm57_vm2 = vcmp.eq.s32.totalorder %v537_v18, %v56_v36 }
  0x90   : > { %v267_v37 = vsel %vm57_vm2, 1.0, %v416_v24 }
  0x91   : > { %v60_v38 = vpack.c.bf16 %v267_v37, %v267_v37 }
  0x92   : > { %v64_v39 = vpop.permute.xlu0 %63 }
  0x93   : > { %296 = vmatmul.mubr.msk.bf16.vlgmr.msra.gmra.mxu0 %vm77_vm3, %v64_v39  ;;  %312 = vmatmul.mubr.msk.bf16.vlgmr.msra.gmra.mxu1 %vm157_vm4, %v60_v38 }
  0x96   : > { %v228_v56 = vpop.permute.xlu0 %227 }
  0x97   : > { %vm229_vm5 = vcmp.eq.s32.totalorder %v228_v56, 1 }
 0x153   : > { %v115_v40 = vpop.f32.mrf.mxu0  ;;  %v195_v41 = vpop.f32.mrf.mxu1 }
 0x154   : > { %v196_v42 = vadd.f32 %v195_v41, %v115_v40 }
 0x155   : > { %v297_v43 = vpop.f32.mrf.mxu0  ;;  %v313_v44 = vpop.f32.mrf.mxu1 }
 0x156   : > { %355 = vtanh.f32 %v196_v42  ;;  %v201_v50 = vmul.f32 0.5, %v196_v42 }
 0x157   : > { %v118_v45 = vpop.f32.mrf.mxu0  ;;  %v198_v46 = vpop.f32.mrf.mxu1 }
 0x158   : > { %357 = vtanh.f32 %v201_v50 }
 0x159   : > { %v298_v47 = vpop.f32.mrf.mxu0  ;;  %v314_v48 = vpop.f32.mrf.mxu1 }
 0x163   : > { %v356_v49 = vpop.eup %355 }
 0x164   : > { %208 = vrot.lane.b32.xlu1 %v356_v49, %s419_s11 }
 0x165   : > { %v358_v51 = vpop.eup %357 }
 0x166   : > { %v203_v52 = vadd.f32 1.0, %v358_v51 }
 0x168   : > { %v204_v53 = vmul.f32 0.5, %v203_v52 }
 0x16a   : > { %v206_v57 = vmul.f32 %v401_v20, %v204_v53 }
 0x1d6   : > { %v209_v54 = vpop.permute.xlu1 %208 }
 0x1d7   : > { %v211_v55 = vmul.f32 %v209_v54, %v204_v53 }
 0x1d9   : > { %213 = vrot.lane.b32.xlu1 %v211_v55, %s418_s10 }
 0x24b   : > { %v214_v58 = vpop.permute.xlu1 %213 }
 0x24c   : > { %v216_v59 = vadd.f32 %v214_v58, %v206_v57 }
 0x24e   : > { %359 = vtanh.f32 %v216_v59  ;;  %v231_v20 = vsel %vm229_vm5, %v216_v59, %v401_v20  }
 0x25b   : > { %v360_v60 = vpop.eup %359 }
 0x25c   : > { %219 = vrot.lane.b32.xlu1 %v360_v60, %s419_s11 }
 0x2ce   : > { %v220_v61 = vpop.permute.xlu1 %219  ;;  %48 = sbr.rel (!%p45_p2) target bundleno = 15 (0xf), region = 44 }
 0x2cf   : > { %v222_v62 = vmul.f32 %v220_v61, %v204_v53 }
 0x2d1   : > { %v230_v63 = vsel %vm229_vm5, %v222_v62, %v405_v21  }
 0x2d2   : > { %v617_v21 = vmov %v230_v63  ;;  %v618_v19 = vmov (%p45_p2), %v230_v63 }
 0x2d3 PF:  { %s420_s12 = smov 32   ;;  %s421_s13 = smov [#allocation4]   ;;  %vm236_vm6 = vcmask 261120   ;;  %v413_v19 = vphi %v550_v19, %v618_v19  }
 0x2d4   :  { %233 = vrot.lane.b32.xlu0 %v413_v19, %s420_s12  ;;  %s244_s14 = sshll.u32 %s421_s13, 4  ;;  %s245_s14 = int_to_ptr.vmem [resolvable:$true] %s244_s14 }
 0x2d5   :  { %s361_s15 = scalar_lea.vmem %s245_s14, 128  ;;  %p366_p4 = scmp.lt.s32.totalorder %s245_s14, %s245_s14 }
 0x2d6   :  { %p362_p3 = scmp.ne.s32.totalorder %s245_s14, %s361_s15  ;;  %p367_p5 = scmp.lt.s32.totalorder %s361_s15, %s361_s15 }
 0x2d8   :  { %p368_p6 = por %p367_p5, %p366_p4 }
 0x2da   :  { %p369_p7 = pnand %p368_p6, %p362_p3 }
 0x346   :  { %v234_v5 = vpop.permute.xlu0 %233 }
 0x347   :  { %237 = vst.msk [vmem:[#allocation4] sm:$0xff] %vm236_vm6, %v234_v5 }
 0x348   :  { %372 = shalt.err (!%p369_p7)
}
 0x349   :  { %247 = dma.vmem_to_hbm [thread:$0]  %s245_s14, 128, %s616_s5, [#allocation5]  }
 0x34a   :  { %397 = dma.done.wait [#allocation5], 128  }
 0x34b   :  { %398 = vsyncadd [#allocation5], 4294967168 }
 0x34c   :  { %251 = vsyncpa [#allocation5], 1 }

</bundles_post_ra>
